<compile_context>
chip_gen: v5e
topology: v5e:2x2
jax: 0.10.0
libtpu: 0.0.40
codegen_flags: <defaults>
</compile_context>

<pallas_src>
import math
from functools import partial

import numpy as np
import jax
import jax.numpy as jnp
from jax import lax
from jax.experimental import pallas as pl
from jax.experimental.pallas import tpu as pltpu


def _round_up(x, m):
    return -(-x // m) * m


def _tpu_tuning():
    """Per-generation (block-budget bytes, vmem-limit cap, need >=2 grid steps)."""
    kind = ""
    try:
        dev = jax.devices()[0]
        if dev.platform == "tpu":
            kind = dev.device_kind.lower()
    except Exception:  # no device info available -> conservative defaults
        pass
    if ("v5 lite" in kind) or ("v5e" in kind) or ("v5litepod" in kind):
        # v5e: 16 MiB scoped-VMEM default, single TensorCore.
        return 6 << 20, 100 << 20, False
    if "v6" in kind:
        # v6e: single TC, 128 MiB physical VMEM -> big blocks, no >=2-step rule.
        return 12 << 20, 100 << 20, False
    if "7" in kind:
        # v7x: 64 MiB physical VMEM, 2 TCs -> keep >=2 parallel grid steps.
        return 10 << 20, 56 << 20, True
    # Unknown (v4/v5p/...): assume megacore, moderate budget.
    return 8 << 20, 64 << 20, True


def _pick_nb(B, per_img_bytes, budget_bytes, need_two_steps):
    """Largest divisor of B that fits the VMEM budget (nb=1 always allowed)."""
    best = 1
    for cand in range(1, B + 1):
        if B % cand:
            continue
        if cand > 1 and cand * per_img_bytes > budget_bytes:
            continue
        if need_two_steps and B > 1 and B // cand < 2:
            continue
        best = cand
    return best


# ---------------------------------------------------------------------------
# Fast path: stride=1, symmetric 'same' padding, odd kernel.
# ---------------------------------------------------------------------------
def _caps_same_kernel(x_ref, w_ref, m_ref, o_ref, xcat_ref, p_ref, *,
                      nb, CinD, HW, HWp, KK, halo_lo, halo_hi, shifts,
                      needs_mask):
    """One batch sub-block of the stride-1 'same' capsule conv.

    x_ref:    (nb, CinD, HW)      input images (original dtype)
    w_ref:    (M, KK*CinD)        fused conv_D*conv_C weights (compute dtype)
    m_ref:    (KK, 1, nb*HWp)     per-tap source-validity masks (compute dtype)
    o_ref:    (nb, M, HWp)        output block (HWp % 128 == 0 -> lane-dense)
    xcat_ref: (CinD, L)           scratch: concatenated images + zero halo/gaps
    p_ref:    (KK*CinD, nb*HWp)   scratch: in-VMEM im2col tile
    """
    cdtype = xcat_ref.dtype
    nbHWp = nb * HWp

    # 1) Concatenate the nb images onto one lane axis.  Halos / inter-image
    #    gaps are re-zeroed every step (cheap) so no cross-step / megacore
    #    init-ordering dependence exists (each grid step is independent).
    if halo_lo > 0:
        xcat_ref[:, pl.ds(0, halo_lo)] = jnp.zeros((CinD, halo_lo), cdtype)
    if halo_hi > 0:
        xcat_ref[:, pl.ds(halo_lo + nbHWp, halo_hi)] = jnp.zeros(
            (CinD, halo_hi), cdtype)
    for b in range(nb):
        off = halo_lo + b * HWp
        xcat_ref[:, pl.ds(off, HW)] = x_ref[b].astype(cdtype)
        if HWp > HW:
            xcat_ref[:, pl.ds(off + HW, HWp - HW)] = jnp.zeros(
                (CinD, HWp - HW), cdtype)

    # 2) Build the im2col tile in VMEM: one masked shifted-window copy per
    #    tap (mask baked into the copy; no per-tap micro-matmuls).
    for kk in range(KK):
        xt = xcat_ref[:, pl.ds(halo_lo + shifts[kk], nbHWp)]
        if needs_mask[kk]:
            xt = xt * m_ref[kk]                       # (1, nbHWp) broadcast
        p_ref[pl.ds(kk * CinD, CinD), :] = xt

    # 3) Single MXU matmul over the full contraction depth (KK*CinD).
    res = jnp.dot(w_ref[...], p_ref[...], preferred_element_type=jnp.float32)

    # 4) Lane-aligned per-image output stores.
    for b in range(nb):
        o_ref[b] = res[:, b * HWp:(b + 1) * HWp].astype(o_ref.dtype)


def _caps_conv_same(x, w_flat, M, KH, KW, padding, dilation, cdtype):
    """x: (B, CinD, H, W); w_flat: (M, KK*CinD) -> (B, M, H, W)."""
    B, CinD, H, W = x.shape
    HW = H * W
    HWp = _round_up(HW, 128)          # lane-dense output / aligned image slots
    KK = KH * KW

    # Per-tap flat shifts and source-validity masks (tiny host-side numpy).
    hh, ww = np.divmod(np.arange(HW), W)
    shifts, needs_mask = [], []
    mask_period = np.zeros((KK, 1, HWp), np.float32)
    for kh in range(KH):
        for kw in range(KW):
            dh = kh * dilation - padding
            dw = kw * dilation - padding
            kk = kh * KW + kw
            shifts.append(dh * W + dw)
            valid = ((hh + dh >= 0) & (hh + dh < H) &
                     (ww + dw >= 0) & (ww + dw < W))
            mask_period[kk, 0, :HW] = valid
            needs_mask.append(not bool(valid.all()))
    halo_need = max([abs(s) for s in shifts] + [0])
    halo_lo = _round_up(halo_need, 128)   # keep per-image offsets lane-aligned
    halo_hi = halo_lo

    # Per-generation batch sub-blocking + VMEM limit.
    x_sz = x.dtype.itemsize
    cd_sz = jnp.dtype(cdtype).itemsize
    o_sz = x.dtype.itemsize
    per_img = (2 * CinD * HW * x_sz            # double-buffered input block
               + 2 * M * HWp * o_sz            # double-buffered output block
               + (KK + 1) * CinD * HWp * cd_sz  # im2col + concat scratch
               + M * HWp * 4)                  # f32 matmul result
    budget, vmem_cap, need_two = _tpu_tuning()
    nb = _pick_nb(B, per_img, budget, need_two)
    vmem_limit = int(min(vmem_cap, max(32 << 20, nb * per_img + (6 << 20))))

    L = halo_lo + nb * HWp + halo_hi
    mask = jnp.asarray(np.tile(mask_period, (1, 1, nb)), dtype=cdtype)
    x_flat = x.reshape(B, CinD, HW)

    kernel = partial(_caps_same_kernel, nb=nb, CinD=CinD, HW=HW, HWp=HWp,
                     KK=KK, halo_lo=halo_lo, halo_hi=halo_hi,
                     shifts=tuple(shifts), needs_mask=tuple(needs_mask))

    cost = pl.CostEstimate(
        flops=2 * B * M * KK * CinD * HW,
        transcendentals=0,
        bytes_accessed=(x_flat.size * x_sz + B * M * HWp * o_sz
                        + w_flat.size * cd_sz + mask.size * cd_sz))

    out = pl.pallas_call(
        kernel,
        out_shape=jax.ShapeDtypeStruct((B, M, HWp), x.dtype),
        grid_spec=pltpu.PrefetchScalarGridSpec(
            num_scalar_prefetch=0,
            grid=(B // nb,),
            in_specs=[
                pl.BlockSpec((nb, CinD, HW), lambda g: (g, 0, 0)),
                pl.BlockSpec((M, KK * CinD), lambda g: (0, 0)),
                pl.BlockSpec((KK, 1, nb * HWp), lambda g: (0, 0, 0)),
            ],
            out_specs=pl.BlockSpec((nb, M, HWp), lambda g: (g, 0, 0)),
            scratch_shapes=[
                pltpu.VMEM((CinD, L), cdtype),              # concat + halo
                pltpu.VMEM((KK * CinD, nb * HWp), cdtype),  # im2col tile
            ]),
        compiler_params=pltpu.CompilerParams(
            dimension_semantics=("parallel",),
            vmem_limit_bytes=vmem_limit),
        cost_estimate=cost,
    )(x_flat, w_flat, mask)

    if HWp != HW:
        out = out[:, :, :HW]
    return out.reshape(B, M, H, W)


# ---------------------------------------------------------------------------
# General path (stride != 1 / non-'same'): host im2col + fused matmul.
# ---------------------------------------------------------------------------
def _caps_general_kernel(p_ref, w_ref, o_ref, *scratch, nb, OHWp):
    # p_ref: (nb, KK*CinD, OHWp)  w_ref: (M, KK*CinD)  o_ref: (nb, M, OHWp)
    if nb == 1:
        o_ref[0] = jnp.dot(w_ref[...], p_ref[0],
                           preferred_element_type=jnp.float32
                           ).astype(o_ref.dtype)
        return
    cat_ref, = scratch                              # (KK*CinD, nb*OHWp)
    for b in range(nb):
        cat_ref[:, pl.ds(b * OHWp, OHWp)] = p_ref[b]
    res = jnp.dot(w_ref[...], cat_ref[...], preferred_element_type=jnp.float32)
    for b in range(nb):
        o_ref[b] = res[:, b * OHWp:(b + 1) * OHWp].astype(o_ref.dtype)


def _caps_conv_general(x, w_flat, M, KH, KW, stride, padding, dilation, cdtype):
    # TODO(synk): move the strided tap extraction in-kernel (pl.ds(start, OW,
    # stride=stride) row windows into a VMEM scratch) to avoid the KH*KW x
    # host-im2col HBM blowup.
    B, CinD, H, W = x.shape
    KK = KH * KW
    OH = (H + 2 * padding - dilation * (KH - 1) - 1) // stride + 1
    OW = (W + 2 * padding - dilation * (KW - 1) - 1) // stride + 1
    OHW = OH * OW
    OHWp = _round_up(OHW, 128)                      # lane-dense stores

    xc = x.astype(cdtype)                           # build/DMA im2col in bf16
    xp = jnp.pad(xc, ((0, 0), (0, 0), (padding, padding), (padding, padding)))
    pats = []
    for kh in range(KH):
        for kw in range(KW):
            hs, ws = kh * dilation, kw * dilation
            pats.append(lax.slice(
                xp, (0, 0, hs, ws),
                (B, CinD, hs + (OH - 1) * stride + 1,
                 ws + (OW - 1) * stride + 1),
                (1, 1, stride, stride)))            # (B, CinD, OH, OW)
    patches = jnp.stack(pats, axis=1).reshape(B, KK * CinD, OHW)
    if OHWp != OHW:
        patches = jnp.pad(patches, ((0, 0), (0, 0), (0, OHWp - OHW)))

    cd_sz = jnp.dtype(cdtype).itemsize
    o_sz = x.dtype.itemsize
    per_img = (2 * KK * CinD * OHWp * cd_sz         # double-buffered patches
               + 2 * M * OHWp * o_sz                # double-buffered output
               + KK * CinD * OHWp * cd_sz           # concat scratch
               + M * OHWp * 4)                      # f32 result
    budget, vmem_cap, need_two = _tpu_tuning()
    nb = _pick_nb(B, per_img, budget, need_two)
    vmem_limit = int(min(vmem_cap, max(32 << 20, nb * per_img + (6 << 20))))

    scratch_shapes = []
    if nb > 1:
        scratch_shapes.append(pltpu.VMEM((KK * CinD, nb * OHWp), cdtype))

    kernel = partial(_caps_general_kernel, nb=nb, OHWp=OHWp)
    cost = pl.CostEstimate(
        flops=2 * B * M * KK * CinD * OHW,
        transcendentals=0,
        bytes_accessed=(patches.size * cd_sz + B * M * OHWp * o_sz
                        + w_flat.size * cd_sz))

    out = pl.pallas_call(
        kernel,
        out_shape=jax.ShapeDtypeStruct((B, M, OHWp), x.dtype),
        grid_spec=pltpu.PrefetchScalarGridSpec(
            num_scalar_prefetch=0,
            grid=(B // nb,),
            in_specs=[
                pl.BlockSpec((nb, KK * CinD, OHWp), lambda g: (g, 0, 0)),
                pl.BlockSpec((M, KK * CinD), lambda g: (0, 0)),
            ],
            out_specs=pl.BlockSpec((nb, M, OHWp), lambda g: (g, 0, 0)),
            scratch_shapes=scratch_shapes),
        compiler_params=pltpu.CompilerParams(
            dimension_semantics=("parallel",),
            vmem_limit_bytes=vmem_limit),
        cost_estimate=cost,
    )(patches, w_flat)

    if OHWp != OHW:
        out = out[:, :, :OHW]
    return out.reshape(B, M, OH, OW)


# ---------------------------------------------------------------------------
# Full Caps_Conv forward (mirrors the PyTorch module).
# ---------------------------------------------------------------------------
def caps_conv_forward(x, w_d, w_c, in_C, in_D, out_C, out_D,
                      stride=1, padding=0, dilation=1,
                      compute_dtype=jnp.bfloat16):
    """x: (B, in_C*in_D, H, W); w_d: (in_C, out_D, in_D);
    w_c: (out_C, in_C, KH, KW)  ->  (B, out_C*out_D, OH, OW).

    Matmul operands are bf16 (f32 accumulation); the output keeps x.dtype.
    """
    B, Cin_tot, H, W = x.shape
    assert Cin_tot == in_C * in_D
    out_Cc, in_Cc, KH, KW = w_c.shape
    assert out_Cc == out_C and in_Cc == in_C
    OH = (H + 2 * padding - dilation * (KH - 1) - 1) // stride + 1
    OW = (W + 2 * padding - dilation * (KW - 1) - 1) // stride + 1
    M = out_C * out_D

    # Fold conv_D into conv_C (tiny host einsum):
    #   w_flat[o*out_D+d, ((kh*KW+kw)*in_C + c)*in_D + i] = w_c[o,c,kh,kw]*w_d[c,d,i]
    w_flat = jnp.einsum('ocxy,cdi->odxyci', w_c, w_d).reshape(
        M, KH * KW * in_C * in_D).astype(compute_dtype)

    # Static path selection (no runtime trial, no host sync).
    same_shape = (stride == 1 and OH == H and OW == W
                  and KH % 2 == 1 and KW % 2 == 1
                  and dilation * (KH - 1) == 2 * padding
                  and dilation * (KW - 1) == 2 * padding)
    if same_shape:
        return _caps_conv_same(x, w_flat, M, KH, KW, padding, dilation,
                               compute_dtype)
    return _caps_conv_general(x, w_flat, M, KH, KW, stride, padding, dilation,
                              compute_dtype)


# Pure-JAX unfused reference (mirrors the PyTorch module op-for-op).
def caps_conv_reference(x, w_d_full, w_c, in_C, in_D, out_C, out_D,
                        stride, padding, dilation):
    dn = ("NCHW", "OIHW", "NCHW")
    y = lax.conv_general_dilated(x, w_d_full, (1, 1), "VALID",
                                 feature_group_count=in_C, dimension_numbers=dn)
    B, _, H, W = y.shape
    y = y.reshape(B, in_C, out_D, H, W).transpose(0, 2, 1, 3, 4)
    y = y.reshape(B * out_D, in_C, H, W)
    z = lax.conv_general_dilated(y, w_c, (stride, stride),
                                 [(padding, padding), (padding, padding)],
                                 rhs_dilation=(dilation, dilation),
                                 dimension_numbers=dn)
    OH, OW = z.shape[2], z.shape[3]
    z = z.reshape(B, out_D, out_C, OH, OW).transpose(0, 2, 1, 3, 4)
    return z.reshape(B, out_C * out_D, OH, OW)


if __name__ == "__main__":
    B, in_C, in_D, out_C, out_D = 2, 4, 4, 8, 8
    H = W = 16
    K = 3

    key = jax.random.PRNGKey(0)
    k1, k2, k3 = jax.random.split(key, 3)

    # Parameter init mirroring the module's __init__ (bias=False).
    m = 1 * 1 * (in_C * out_D)
    w_d_full = jax.random.normal(k1, (in_C * out_D, in_D, 1, 1),
                                 jnp.float32) * math.sqrt(2.0 / m)
    n = K * K * out_C
    w_c = jax.random.normal(k2, (out_C, in_C, K, K),
                            jnp.float32) * math.sqrt(2.0 / n)
    x = jax.random.normal(k3, (B, in_C * in_D, H, W), jnp.float32)

    # Grouped 1x1 weight regrouped as (in_C, out_D, in_D).
    w_d = w_d_full.reshape(in_C, out_D, in_D)

    # bf16 operands + f32 accumulation -> bf16-appropriate tolerances vs the
    # f32 reference.
    TOL = 2e-2

    # Config 1: stride=1, padding=1 ('same') -> fused in-kernel-im2col path.
    out = caps_conv_forward(x, w_d, w_c, in_C, in_D, out_C, out_D,
                            stride=1, padding=1, dilation=1)
    out = jax.block_until_ready(out)
    ref = caps_conv_reference(x, w_d_full, w_c, in_C, in_D, out_C, out_D,
                              1, 1, 1)
    assert out.shape == (B, out_C * out_D, H, W), out.shape
    assert jnp.allclose(out, ref, atol=TOL, rtol=TOL), \
        float(jnp.max(jnp.abs(out - ref)))

    # Config 2: stride=2, padding=0 -> general (host-im2col) path.
    out2 = caps_conv_forward(x, w_d, w_c, in_C, in_D, out_C, out_D,
                             stride=2, padding=0, dilation=1)
    out2 = jax.block_until_ready(out2)
    ref2 = caps_conv_reference(x, w_d_full, w_c, in_C, in_D, out_C, out_D,
                               2, 0, 1)
    assert out2.shape == ref2.shape, (out2.shape, ref2.shape)
    assert jnp.allclose(out2, ref2, atol=TOL, rtol=TOL), \
        float(jnp.max(jnp.abs(out2 - ref2)))

    print("KERNEL_OK")
</pallas_src>

<mosaic_0001>
module attributes {stable_mosaic.version = 11 : i64} {
  func.func @_caps_same_kernel(%arg0: i32, %arg1: memref<1x16x256xf32, #tpu.memory_space<vmem>>, %arg2: memref<64x144xbf16, #tpu.memory_space<vmem>>, %arg3: memref<9x1x256xbf16, #tpu.memory_space<vmem>>, %arg4: memref<1x64x256xf32, #tpu.memory_space<vmem>>, %arg5: memref<16x512xbf16, #tpu.memory_space<vmem>>, %arg6: memref<144x256xbf16, #tpu.memory_space<vmem>>) attributes {dimension_semantics = [#tpu.dimension_semantics<parallel>], iteration_bounds = array<i64: 2>, scalar_prefetch = 0 : i64, scratch_operands = 2 : i64, tpu.core_type = #tpu.core_type<tc>, window_params = [{transform_indices = @transform_0, window_bounds = array<i64: 1, 16, 256>}, {pipeline_mode = #tpu.pipeline_mode<synchronous>, transform_indices = @transform_1, window_bounds = array<i64: 64, 144>}, {pipeline_mode = #tpu.pipeline_mode<synchronous>, transform_indices = @transform_2, window_bounds = array<i64: 9, 1, 256>}, {transform_indices = @transform_3, window_bounds = array<i64: 1, 64, 256>}]} {
    %cst = arith.constant 0.000000e+00 : bf16
    %0 = vector.broadcast %cst : bf16 to vector<16x128xbf16>
    %c0 = arith.constant 0 : index
    %c0_0 = arith.constant 0 : index
    %1 = vector.load %arg5[%c0, %c0_0] : memref<16x512xbf16, #tpu.memory_space<vmem>>, vector<16x128xbf16>
    tpu.vector_store %arg5[%c0, %c0_0], %0 {strides = array<i32>} : memref<16x512xbf16, #tpu.memory_space<vmem>>, vector<16x128xbf16>,
    %cst_1 = arith.constant 0.000000e+00 : bf16
    %2 = vector.broadcast %cst_1 : bf16 to vector<16x128xbf16>
    %c0_2 = arith.constant 0 : index
    %c384 = arith.constant 384 : index
    %3 = vector.load %arg5[%c0_2, %c384] : memref<16x512xbf16, #tpu.memory_space<vmem>>, vector<16x128xbf16>
    tpu.vector_store %arg5[%c0_2, %c384], %2 {strides = array<i32>} : memref<16x512xbf16, #tpu.memory_space<vmem>>, vector<16x128xbf16>,
    %c0_3 = arith.constant 0 : index
    %c0_4 = arith.constant 0 : index
    %c0_5 = arith.constant 0 : index
    %4 = vector.load %arg1[%c0_3, %c0_4, %c0_5] : memref<1x16x256xf32, #tpu.memory_space<vmem>>, vector<1x16x256xf32>
    %5 = vector.shape_cast %4 : vector<1x16x256xf32> to vector<16x256xf32>
    %6 = arith.truncf %5 : vector<16x256xf32> to vector<16x256xbf16>
    %c0_6 = arith.constant 0 : index
    %c128 = arith.constant 128 : index
    %7 = vector.load %arg5[%c0_6, %c128] : memref<16x512xbf16, #tpu.memory_space<vmem>>, vector<16x256xbf16>
    tpu.vector_store %arg5[%c0_6, %c128], %6 {strides = array<i32>} : memref<16x512xbf16, #tpu.memory_space<vmem>>, vector<16x256xbf16>,
    %c0_7 = arith.constant 0 : index
    %c111 = arith.constant 111 : index
    %8 = vector.load %arg5[%c0_7, %c111] : memref<16x512xbf16, #tpu.memory_space<vmem>>, vector<16x256xbf16>
    %c0_8 = arith.constant 0 : index
    %c0_9 = arith.constant 0 : index
    %c0_10 = arith.constant 0 : index
    %9 = vector.load %arg3[%c0_8, %c0_9, %c0_10] : memref<9x1x256xbf16, #tpu.memory_space<vmem>>, vector<1x1x256xbf16>
    %10 = vector.shape_cast %9 : vector<1x1x256xbf16> to vector<1x256xbf16>
    %11 = vector.broadcast %10 : vector<1x256xbf16> to vector<16x256xbf16>
    %12 = arith.mulf %8, %11 : vector<16x256xbf16>
    %c0_11 = arith.constant 0 : index
    %c0_12 = arith.constant 0 : index
    %13 = vector.load %arg6[%c0_11, %c0_12] : memref<144x256xbf16, #tpu.memory_space<vmem>>, vector<16x256xbf16>
    tpu.vector_store %arg6[%c0_11, %c0_12], %12 {strides = array<i32>} : memref<144x256xbf16, #tpu.memory_space<vmem>>, vector<16x256xbf16>,
    %c0_13 = arith.constant 0 : index
    %c112 = arith.constant 112 : index
    %14 = vector.load %arg5[%c0_13, %c112] : memref<16x512xbf16, #tpu.memory_space<vmem>>, vector<16x256xbf16>
    %c1 = arith.constant 1 : index
    %c0_14 = arith.constant 0 : index
    %c0_15 = arith.constant 0 : index
    %15 = vector.load %arg3[%c1, %c0_14, %c0_15] : memref<9x1x256xbf16, #tpu.memory_space<vmem>>, vector<1x1x256xbf16>
    %16 = vector.shape_cast %15 : vector<1x1x256xbf16> to vector<1x256xbf16>
    %17 = vector.broadcast %16 : vector<1x256xbf16> to vector<16x256xbf16>
    %18 = arith.mulf %14, %17 : vector<16x256xbf16>
    %c16 = arith.constant 16 : index
    %c0_16 = arith.constant 0 : index
    %19 = vector.load %arg6[%c16, %c0_16] : memref<144x256xbf16, #tpu.memory_space<vmem>>, vector<16x256xbf16>
    tpu.vector_store %arg6[%c16, %c0_16], %18 {strides = array<i32>} : memref<144x256xbf16, #tpu.memory_space<vmem>>, vector<16x256xbf16>,
    %c0_17 = arith.constant 0 : index
    %c113 = arith.constant 113 : index
    %20 = vector.load %arg5[%c0_17, %c113] : memref<16x512xbf16, #tpu.memory_space<vmem>>, vector<16x256xbf16>
    %c2 = arith.constant 2 : index
    %c0_18 = arith.constant 0 : index
    %c0_19 = arith.constant 0 : index
    %21 = vector.load %arg3[%c2, %c0_18, %c0_19] : memref<9x1x256xbf16, #tpu.memory_space<vmem>>, vector<1x1x256xbf16>
    %22 = vector.shape_cast %21 : vector<1x1x256xbf16> to vector<1x256xbf16>
    %23 = vector.broadcast %22 : vector<1x256xbf16> to vector<16x256xbf16>
    %24 = arith.mulf %20, %23 : vector<16x256xbf16>
    %c32 = arith.constant 32 : index
    %c0_20 = arith.constant 0 : index
    %25 = vector.load %arg6[%c32, %c0_20] : memref<144x256xbf16, #tpu.memory_space<vmem>>, vector<16x256xbf16>
    tpu.vector_store %arg6[%c32, %c0_20], %24 {strides = array<i32>} : memref<144x256xbf16, #tpu.memory_space<vmem>>, vector<16x256xbf16>,
    %c0_21 = arith.constant 0 : index
    %c127 = arith.constant 127 : index
    %26 = vector.load %arg5[%c0_21, %c127] : memref<16x512xbf16, #tpu.memory_space<vmem>>, vector<16x256xbf16>
    %c3 = arith.constant 3 : index
    %c0_22 = arith.constant 0 : index
    %c0_23 = arith.constant 0 : index
    %27 = vector.load %arg3[%c3, %c0_22, %c0_23] : memref<9x1x256xbf16, #tpu.memory_space<vmem>>, vector<1x1x256xbf16>
    %28 = vector.shape_cast %27 : vector<1x1x256xbf16> to vector<1x256xbf16>
    %29 = vector.broadcast %28 : vector<1x256xbf16> to vector<16x256xbf16>
    %30 = arith.mulf %26, %29 : vector<16x256xbf16>
    %c48 = arith.constant 48 : index
    %c0_24 = arith.constant 0 : index
    %31 = vector.load %arg6[%c48, %c0_24] : memref<144x256xbf16, #tpu.memory_space<vmem>>, vector<16x256xbf16>
    tpu.vector_store %arg6[%c48, %c0_24], %30 {strides = array<i32>} : memref<144x256xbf16, #tpu.memory_space<vmem>>, vector<16x256xbf16>,
    %c0_25 = arith.constant 0 : index
    %c128_26 = arith.constant 128 : index
    %32 = vector.load %arg5[%c0_25, %c128_26] : memref<16x512xbf16, #tpu.memory_space<vmem>>, vector<16x256xbf16>
    %c64 = arith.constant 64 : index
    %c0_27 = arith.constant 0 : index
    %33 = vector.load %arg6[%c64, %c0_27] : memref<144x256xbf16, #tpu.memory_space<vmem>>, vector<16x256xbf16>
    tpu.vector_store %arg6[%c64, %c0_27], %32 {strides = array<i32>} : memref<144x256xbf16, #tpu.memory_space<vmem>>, vector<16x256xbf16>,
    %c0_28 = arith.constant 0 : index
    %c129 = arith.constant 129 : index
    %34 = vector.load %arg5[%c0_28, %c129] : memref<16x512xbf16, #tpu.memory_space<vmem>>, vector<16x256xbf16>
    %c5 = arith.constant 5 : index
    %c0_29 = arith.constant 0 : index
    %c0_30 = arith.constant 0 : index
    %35 = vector.load %arg3[%c5, %c0_29, %c0_30] : memref<9x1x256xbf16, #tpu.memory_space<vmem>>, vector<1x1x256xbf16>
    %36 = vector.shape_cast %35 : vector<1x1x256xbf16> to vector<1x256xbf16>
    %37 = vector.broadcast %36 : vector<1x256xbf16> to vector<16x256xbf16>
    %38 = arith.mulf %34, %37 : vector<16x256xbf16>
    %c80 = arith.constant 80 : index
    %c0_31 = arith.constant 0 : index
    %39 = vector.load %arg6[%c80, %c0_31] : memref<144x256xbf16, #tpu.memory_space<vmem>>, vector<16x256xbf16>
    tpu.vector_store %arg6[%c80, %c0_31], %38 {strides = array<i32>} : memref<144x256xbf16, #tpu.memory_space<vmem>>, vector<16x256xbf16>,
    %c0_32 = arith.constant 0 : index
    %c143 = arith.constant 143 : index
    %40 = vector.load %arg5[%c0_32, %c143] : memref<16x512xbf16, #tpu.memory_space<vmem>>, vector<16x256xbf16>
    %c6 = arith.constant 6 : index
    %c0_33 = arith.constant 0 : index
    %c0_34 = arith.constant 0 : index
    %41 = vector.load %arg3[%c6, %c0_33, %c0_34] : memref<9x1x256xbf16, #tpu.memory_space<vmem>>, vector<1x1x256xbf16>
    %42 = vector.shape_cast %41 : vector<1x1x256xbf16> to vector<1x256xbf16>
    %43 = vector.broadcast %42 : vector<1x256xbf16> to vector<16x256xbf16>
    %44 = arith.mulf %40, %43 : vector<16x256xbf16>
    %c96 = arith.constant 96 : index
    %c0_35 = arith.constant 0 : index
    %45 = vector.load %arg6[%c96, %c0_35] : memref<144x256xbf16, #tpu.memory_space<vmem>>, vector<16x256xbf16>
    tpu.vector_store %arg6[%c96, %c0_35], %44 {strides = array<i32>} : memref<144x256xbf16, #tpu.memory_space<vmem>>, vector<16x256xbf16>,
    %c0_36 = arith.constant 0 : index
    %c144 = arith.constant 144 : index
    %46 = vector.load %arg5[%c0_36, %c144] : memref<16x512xbf16, #tpu.memory_space<vmem>>, vector<16x256xbf16>
    %c7 = arith.constant 7 : index
    %c0_37 = arith.constant 0 : index
    %c0_38 = arith.constant 0 : index
    %47 = vector.load %arg3[%c7, %c0_37, %c0_38] : memref<9x1x256xbf16, #tpu.memory_space<vmem>>, vector<1x1x256xbf16>
    %48 = vector.shape_cast %47 : vector<1x1x256xbf16> to vector<1x256xbf16>
    %49 = vector.broadcast %48 : vector<1x256xbf16> to vector<16x256xbf16>
    %50 = arith.mulf %46, %49 : vector<16x256xbf16>
    %c112_39 = arith.constant 112 : index
    %c0_40 = arith.constant 0 : index
    %51 = vector.load %arg6[%c112_39, %c0_40] : memref<144x256xbf16, #tpu.memory_space<vmem>>, vector<16x256xbf16>
    tpu.vector_store %arg6[%c112_39, %c0_40], %50 {strides = array<i32>} : memref<144x256xbf16, #tpu.memory_space<vmem>>, vector<16x256xbf16>,
    %c0_41 = arith.constant 0 : index
    %c145 = arith.constant 145 : index
    %52 = vector.load %arg5[%c0_41, %c145] : memref<16x512xbf16, #tpu.memory_space<vmem>>, vector<16x256xbf16>
    %c8 = arith.constant 8 : index
    %c0_42 = arith.constant 0 : index
    %c0_43 = arith.constant 0 : index
    %53 = vector.load %arg3[%c8, %c0_42, %c0_43] : memref<9x1x256xbf16, #tpu.memory_space<vmem>>, vector<1x1x256xbf16>
    %54 = vector.shape_cast %53 : vector<1x1x256xbf16> to vector<1x256xbf16>
    %55 = vector.broadcast %54 : vector<1x256xbf16> to vector<16x256xbf16>
    %56 = arith.mulf %52, %55 : vector<16x256xbf16>
    %c128_44 = arith.constant 128 : index
    %c0_45 = arith.constant 0 : index
    %57 = vector.load %arg6[%c128_44, %c0_45] : memref<144x256xbf16, #tpu.memory_space<vmem>>, vector<16x256xbf16>
    tpu.vector_store %arg6[%c128_44, %c0_45], %56 {strides = array<i32>} : memref<144x256xbf16, #tpu.memory_space<vmem>>, vector<16x256xbf16>,
    %c0_46 = arith.constant 0 : index
    %c0_47 = arith.constant 0 : index
    %58 = vector.load %arg2[%c0_46, %c0_47] : memref<64x144xbf16, #tpu.memory_space<vmem>>, vector<64x144xbf16>
    %c0_48 = arith.constant 0 : index
    %c0_49 = arith.constant 0 : index
    %59 = vector.load %arg6[%c0_48, %c0_49] : memref<144x256xbf16, #tpu.memory_space<vmem>>, vector<144x256xbf16>
    %cst_50 = arith.constant dense<0.000000e+00> : vector<64x256xf32>
    %60 = tpu.matmul %58, %59, %cst_50 {dimension_numbers = #tpu.dot_dimension_numbers<[1], [0], [0], [1], [0, 0, 1, 1], [], []>} : vector<64x144xbf16>, vector<144x256xbf16>, vector<64x256xf32> -> vector<64x256xf32>
    %c0_51 = arith.constant 0 : index
    %c0_52 = arith.constant 0 : index
    %c0_53 = arith.constant 0 : index
    %61 = vector.load %arg4[%c0_51, %c0_52, %c0_53] : memref<1x64x256xf32, #tpu.memory_space<vmem>>, vector<1x64x256xf32>
    %62 = vector.shape_cast %61 : vector<1x64x256xf32> to vector<64x256xf32>
    %63 = vector.shape_cast %60 : vector<64x256xf32> to vector<1x64x256xf32>
    tpu.vector_store %arg4[%c0_51, %c0_52, %c0_53], %63 {strides = array<i32>} : memref<1x64x256xf32, #tpu.memory_space<vmem>>, vector<1x64x256xf32>,
    return
  }
  func.func @transform_0(%arg0: i32) -> (i32, i32, i32) {
    %c0_i32 = arith.constant 0 : i32
    %c0_i32_0 = arith.constant 0 : i32
    %c0_i32_1 = arith.constant 0 : i32
    return %arg0, %c0_i32, %c0_i32_0 : i32, i32, i32
  }
  func.func @transform_1(%arg0: i32) -> (i32, i32) {
    %c0_i32 = arith.constant 0 : i32
    %c0_i32_0 = arith.constant 0 : i32
    %c0_i32_1 = arith.constant 0 : i32
    return %c0_i32, %c0_i32_0 : i32, i32
  }
  func.func @transform_2(%arg0: i32) -> (i32, i32, i32) {
    %c0_i32 = arith.constant 0 : i32
    %c0_i32_0 = arith.constant 0 : i32
    %c0_i32_1 = arith.constant 0 : i32
    %c0_i32_2 = arith.constant 0 : i32
    return %c0_i32, %c0_i32_0, %c0_i32_1 : i32, i32, i32
  }
  func.func @transform_3(%arg0: i32) -> (i32, i32, i32) {
    %c0_i32 = arith.constant 0 : i32
    %c0_i32_0 = arith.constant 0 : i32
    %c0_i32_1 = arith.constant 0 : i32
    return %arg0, %c0_i32, %c0_i32_0 : i32, i32, i32
  }
}

</mosaic_0001>

<bundles_post_ra>
// kernel: tpu_custom_call.1
= control target key start
LH: loop header
LB: loop body
LE: loop exit
PB: predicated region body
PF: predicated region fallthrough
CT: control target
= control target key end

     0   :  { %8 = vsyncpa [#allocation5], 0  ;;  %s1998_s0 = inlined_call_operand.hbm [shape: f32[2,16,256], index: 0, kind: input, shape index: {}]   ;;  %s1999_s1 = inlined_call_operand.hbm [shape: bf16[64,144], index: 1, kind: input, shape index: {}]   ;;  %s2000_s2 = inlined_call_operand.vmem [shape: bf16[9,1,256], index: 2, kind: input, shape index: {}]   ;;  %s2001_s3 = inlined_call_operand.hbm [shape: f32[2,64,256], index: 3, kind: output, shape index: {}]  }
   0x1   :  { %10 = vsyncpa [#allocation5 + $0x1], 0 }
   0x2   :  { %11 = vsyncpa [#allocation8], 0 }
   0x3   :  { %12 = vsyncpa [#allocation6], 0 }
   0x4   :  { %14 = vsyncpa [#allocation6 + $0x1], 0  ;;  %s1621_s12 = smov 0   ;;  %s1623_s13 = smov 0  }
   0x5   :  { %s1625_s14 = smov 0   ;;  %s1627_s15 = smov 0  }
   0x6 LB: > { %s1642_s16 = sadd.s32 4294967295, %s1584_s15   ;;  %s1180_s17 = sadd.s32 4294967294, %s1584_s15   ;;  %s1584_s15 = sphi %s1627_s15, %s2011_s15   ;;  %s1580_s14 = sphi %s1625_s14, %s2010_s14   ;;  %s1576_s13 = sphi %s1623_s13, %s2009_s13   ;;  %s1572_s12 = sphi %s1621_s12, %s2008_s12  }
   0x7   : > { %p40_p0 = scmp.ne.s32.totalorder %s1576_s13, %s1572_s12  ;;  %p41_p1 = scmp.eq.s32.totalorder %s1642_s16, 0 }
   0x8   : > { %p106_p2 = scmp.eq.s32.totalorder %s1642_s16, 1  ;;  %p112_p3 = scmp.eq.s32.totalorder %s1180_s17, 1 }
   0x9   : > { %p1651_p4 = por %p41_p1, %p40_p0  ;;  %p1181_p5 = scmp.ge.s32.totalorder %s1584_s15, 1 }
   0xa   : > { %p1656_p6 = por %p112_p3, %p40_p0  ;;  %p119_p7 = scmp.lt.s32.totalorder %s1584_s15, 3 }
   0xb   : > { %s130_s22 = sshll.u32 %s1999_s1, 4  ;;  %s1586_s24 = smov [#allocation7]   ;;  %s131_s22 = int_to_ptr.hbm [resolvable:$true] %s130_s22 }
   0xc   : > { %p1664_p8 = pnand %p1181_p5, %p119_p7  ;;  %s132_s25 = sshll.u32 %s1586_s24, 4  ;;  %s133_s25 = int_to_ptr.vmem [resolvable:$true] %s132_s25 }
   0xd   : > { %s1674_s26 = sadd.s32 1, %s1584_s15   ;;  %s1587_s27 = smov 128  }
   0xe   : > { %p1351_p9 = pneg %p1664_p8  ;;  %s1588_s28 = smov 8  }
   0xf   : > { %s24_s29 = ssub.s32 %s1584_s15, %s1674_s26  ;;  %s27_s30 = sadd.s32 1, %s1580_s14 }
  0x10   : > { %p1352_p10 = pnand %p1351_p9, %p41_p1  ;;  %p25_p12 = scmp.eq.s32.totalorder %s24_s29, 0 }
  0x11   : > { %p34_p13 = scmp.ne.s32.totalorder %s1580_s14, %s1576_s13  ;;  %p35_p0 = scmp.eq.s32.totalorder %s1584_s15, 0 }
  0x12   : > { %1354 = dma.hbm_to_vmem [thread:$0]  (!%p1352_p10), %s131_s22, 1024, %s133_s25, [#allocation8], %s1587_s27, %s1587_s27, %s1588_s28  }
  0x13   : > { %p1364_p3 = scmp.lt.s32.totalorder %s1584_s15, 2  ;;  %p36_p5 = por %p35_p0, %p34_p13 }
  0x14   : > { %s1684_s4 = scalar_select %p25_p12, %s1580_s14, %s27_s30  }
  0x15   : > { %p1688_p7 = por %p106_p2, %p34_p13  ;;  %s149_s6 = sand.u32 1, %s1580_s14  }
  0x16   : > { %s1315_s7 = sshll.u32 %s1584_s15, 5  ;;  %s1184_s8 = sshll.u32 %s149_s6, 5 }
  0x17   : > { %s158_s11 = scalar_lea.hbm %s1998_s0, %s1315_s7  ;;  %s153_s20 = scalar_lea.vmem [#allocation4], %s1184_s8 }
  0x18   : > { %s159_s17 = sshll.u32 %s158_s11, 4  ;;  %s161_s21 = sshll.u32 %s153_s20, 4  ;;  %s160_s17 = int_to_ptr.hbm [resolvable:$true] %s159_s17  ;;  %s162_s21 = int_to_ptr.vmem [resolvable:$true] %s161_s21 }
  0x19   : > { %p1699_p9 = pnand %p1364_p3, %p36_p5  ;;  %s150_s24 = scalar_lea.sflag [#allocation5], %s149_s6 }
  0x1a   : > { %s1484_s25 = sshra.s32 %s160_s17, 4  ;;  %s1491_s30 = scalar_lea.hbm %s1998_s0, 64  ;;  %s1485_s25 = int_to_ptr.hbm [resolvable:$true] %s1484_s25 }
  0x1b   : > { %s1486_s27 = scalar_lea.hbm %s1485_s25, 32  ;;  %p1488_p10 = pneg %p1699_p9 }
  0x1c   : > { %p1487_p2 = scmp.ne.s32.totalorder %s1485_s25, %s1486_s27  ;;  %p1492_p0 = scmp.lt.s32.totalorder %s1485_s25, %s1998_s0 }
  0x1d   : > { %p1493_p3 = scmp.lt.s32.totalorder %s1491_s30, %s1486_s27 }
  0x1e   : > { %p1489_p12 = pnand %p1488_p10, %p1487_p2 }
  0x1f   : > { %p1494_p5 = por %p1493_p3, %p1492_p0 }
  0x20   : > { %p1490_p13 = pneg %p1489_p12 }
  0x22   : > { %p1495_p11 = pnand %p1494_p5, %p1490_p13 }
  0x24   : > { %1498 = shalt.err (!%p1495_p11)
}
  0x25   : > { %s1589_s6 = smov 256   ;;  %s1590_s9 = smov 16  }
  0x26   : > { %1358 = dma.hbm_to_vmem [thread:$0]  (!%p1699_p9), %s160_s17, 512, %s162_s21, %s150_s24, %s1589_s6, %s1589_s6, %s1590_s9  }
  0x27   : > { %173 = sbr.rel (%p1664_p8) target bundleno = 601 (0x259), region = 32  ;;  %s1716_s10 = sand.u32 (!%p1664_p8), 1, %s1576_s13  }
  0x28   : > { %s1188_s11 = sshll.u32 (!%p1664_p8), %s1716_s10, 5  ;;  %s176_s20 = scalar_lea.sflag (!%p1664_p8), [#allocation5], %s1716_s10 }
  0x29   : > { %s1720_s25 = scalar_lea.vmem (!%p1664_p8), [#allocation4], %s1188_s11 }
  0x2c   : > { %1559 = dma.done.wait (%p1651_p4), %s176_s20, 512  }
  0x2d   : > { %1561 = vsyncadd (%p1651_p4), %s176_s20, 4294966784 }
  0x2e   : > { %1563 = dma.done.wait (%p41_p1), [#allocation8], 1024  }
  0x2f   : > { %1565 = vsyncadd (%p41_p1), [#allocation8], 4294966272  ;;  %v225_v0 = vld [vmem:[%s2000_s2] sm:$0x3]  ;;  %v1191_v1 = vld [vmem:[%s2000_s2 + $0x2] sm:$0x3] }
  0x30   : > { %227 = vst [vmem:[#allocation1] ss:$9 sm:$0xff] %v225_v0  ;;  %v1192_v10 = vld [vmem:[%s2000_s2 + $0x4] sm:$0x3]  ;;  %s1591_s27 = smov 111   ;;  %s1592_s30 = smov 112  }
  0x31   : > { %v1193_v20 = vld [vmem:[%s2000_s2 + $0x6] sm:$0x3]  ;;  %v1194_v30 = vld [vmem:[%s2000_s2 + $0xa] sm:$0x3]  ;;  %s1593_s6 = smov 113   ;;  %s1594_s20 = smov 127  }
  0x32   : > { %v1195_v40 = vld [vmem:[%s2000_s2 + $0xc] sm:$0x3]  ;;  %v1196_v50 = vld [vmem:[%s2000_s2 + $0xe] sm:$0x3]  ;;  %s1595_s21 = smov 1   ;;  %s1596_s24 = smov 15  }
  0x33   : > { %v1197_v60 = vld [vmem:[%s2000_s2 + $0x10] sm:$0x3]  ;;  %s1597_s28 = smov 16   ;;  %s1598_s29 = smov 17   ;;  %vm321_vm0 = vcmask 916480   ;;  %vm391_vm1 = vcmask 924672  }
  0x34   : > { %vm250_vm2 = vcmask 908288   ;;  %vm461_vm3 = vcmask 1039360   ;;  %vm493_vm4 = vcmask 7168   ;;  %vm423_vm5 = vcmask 121856   ;;  %s1534_s22 = scalar_lea.hbm %s2001_s3, 256 }
  0x35   : > { %vm353_vm6 = vcmask 130048   ;;  %vm283_vm7 = vcmask 138240   ;;  %vm281_vm8 = vcmask 1043456  }
  0x37   : > { %v228_v2 = vld [vmem:[#allocation1] sm:$0xff]  ;;  %v229_v3 = vld [vmem:[#allocation1 + $0x9] sm:$0xff] }
  0x38   : > { %298 = vst [vmem:[#allocation1] ss:$9 sm:$0xff] %v1191_v1  ;;  %v230_v4 = vpack.i.b16 %v228_v2, %v228_v2  ;;  %v233_v5 = vpack.i.b16 %v229_v3, %v229_v3 }
  0x3a   : > { %v232_v6 = vperm.slane %v230_v4, 0  ;;  %v235_v7 = vperm.slane %v233_v5, 0 }
  0x3c   : > { %v242_v8 = vunpack.c.l.bf16 %v232_v6  ;;  %v243_v9 = vunpack.c.l.bf16 %v235_v7 }
  0x3e   : > { %v1414_v11 = vpack.i.bf16 %v243_v9, %v242_v8 }
  0x3f   : > { %v299_v12 = vld [vmem:[#allocation1] sm:$0xff]  ;;  %v300_v13 = vld [vmem:[#allocation1 + $0x9] sm:$0xff] }
  0x40   : > { %v301_v14 = vpack.i.b16 %v299_v12, %v299_v12  ;;  %v304_v15 = vpack.i.b16 %v300_v13, %v300_v13  ;;  %368 = vst [vmem:[#allocation1] ss:$9 sm:$0xff] %v1192_v10  ;;  %1415 = vrot.lane.b32.xlu0 %v1414_v11, %s1591_s27 }
  0x42   : > { %v303_v16 = vperm.slane %v301_v14, 0  ;;  %v306_v17 = vperm.slane %v304_v15, 0 }
  0x44   : > { %v313_v18 = vunpack.c.l.bf16 %v303_v16  ;;  %v314_v19 = vunpack.c.l.bf16 %v306_v17  ;;  %v215_v16 = vld [vmem:[%s1720_s25 + $0x10] sm:$0xff]  ;;  %v216_v17 = vld [vmem:[%s1720_s25 + $0x18] sm:$0xff] }
  0x46   : > { %v1419_v21 = vpack.i.bf16 %v314_v19, %v313_v18  ;;  %v1764_v18 = vpack.c.bf16 %v216_v17, %v215_v16  ;;  %v213_v19 = vld [vmem:[%s1720_s25] sm:$0xff] }
  0x47   : > { %v369_v22 = vld [vmem:[#allocation1] sm:$0xff]  ;;  %v370_v23 = vld [vmem:[#allocation1 + $0x9] sm:$0xff] }
  0x48   : > { %1420 = vrot.lane.b32.xlu2 %v1419_v21, %s1592_s30  ;;  %v371_v24 = vpack.i.b16 %v369_v22, %v369_v22  ;;  %v374_v25 = vpack.i.b16 %v370_v23, %v370_v23  ;;  %438 = vst [vmem:[#allocation1] ss:$9 sm:$0xff] %v1193_v20  ;;  %v214_v20 = vld [vmem:[%s1720_s25 + $0x8] sm:$0xff]  ;;  %v1599_v22 = vmov 0   ;;  %s1190_s25 = sshll.u32 %s1716_s10, 7 }
  0x49   : > { %220 = vst [vmem:[#allocation2 + $0x14] sm:$0xff] %v1764_v18  ;;  %v1770_v21 = vpack.c.bf16 %v214_v20, %v213_v19  ;;  %v1825_v20 = vunpack.c.l.bf16 %v1764_v18 }
  0x4a   : > { %v373_v26 = vperm.slane %v371_v24, 0  ;;  %v376_v27 = vperm.slane %v374_v25, 0  ;;  %504 = vst [vmem:[#allocation3 + $0x48] sm:$0xff] %v1764_v18 }
  0x4b   : > { %219 = vst [vmem:[#allocation2 + $0x4] sm:$0xff] %v1770_v21 }
  0x4c   : > { %v383_v28 = vunpack.c.l.bf16 %v373_v26  ;;  %v384_v29 = vunpack.c.l.bf16 %v376_v27  ;;  %209 = vst [vmem:[#allocation2] sm:$0xf] %v1599_v22 }
  0x4d   : > { %210 = vst [vmem:[#allocation2 + $0x10] sm:$0xf] %v1599_v22 }
  0x4e   : > { %v1424_v31 = vpack.i.bf16 %v384_v29, %v383_v28  ;;  %211 = vst [vmem:[#allocation2 + $0xc] sm:$0xf] %v1599_v22 }
  0x4f   : > { %v439_v32 = vld [vmem:[#allocation1] sm:$0xff]  ;;  %v440_v33 = vld [vmem:[#allocation1 + $0x9] sm:$0xff]  ;;  %212 = vst [vmem:[#allocation2 + $0x1c] sm:$0xf] %v1599_v22 }
  0x50   : > { %1425 = vrot.lane.b32.xlu2 %v1424_v31, %s1593_s6  ;;  %v441_v34 = vpack.i.b16 %v439_v32, %v439_v32  ;;  %v444_v35 = vpack.i.b16 %v440_v33, %v440_v33  ;;  %512 = vst [vmem:[#allocation1] ss:$9 sm:$0xff] %v1194_v30 }
  0x51   : > { %503 = vst [vmem:[#allocation3 + $0x40] sm:$0xff] %v1770_v21 }
  0x52   : > { %v443_v36 = vperm.slane %v441_v34, 0  ;;  %v446_v37 = vperm.slane %v444_v35, 0  ;;  %v364_v35 = vld [vmem:[#allocation2 + $0x18] sm:$0xf] }
  0x53   : > { %v361_v23 = vld [vmem:[#allocation2] sm:$0xff] }
  0x54   : > { %v453_v38 = vunpack.c.l.bf16 %v443_v36  ;;  %v454_v39 = vunpack.c.l.bf16 %v446_v37  ;;  %v363_v24 = vld [vmem:[#allocation2 + $0x10] sm:$0xff]  ;;  %v1774_v25 = vunpack.c.l.bf16 %v361_v23  ;;  %v1776_v28 = vunpack.c.h.bf16 %v361_v23  ;;  %v362_v36 = vld [vmem:[#allocation2 + $0x8] sm:$0xf] }
  0x55   : > { %v380_v26 = vunpack.c.l.bf16 %v363_v24  ;;  %v381_v29 = vunpack.c.h.bf16 %v363_v24  ;;  %v1829_v23 = vunpack.c.h.bf16 %v1764_v18  ;;  %v1837_v18 = vunpack.c.l.bf16 %v1770_v21 }
  0x56   : > { %v1429_v41 = vpack.i.bf16 %v454_v39, %v453_v38 }
  0x57   : > { %v513_v42 = vld [vmem:[#allocation1] sm:$0xff]  ;;  %v514_v43 = vld [vmem:[#allocation1 + $0x9] sm:$0xff] }
  0x58   : > { %1430 = vrot.lane.b32.xlu1 %v1429_v41, %s1594_s20  ;;  %v515_v44 = vpack.i.b16 %v513_v42, %v513_v42  ;;  %v518_v45 = vpack.i.b16 %v514_v43, %v514_v43  ;;  %582 = vst [vmem:[#allocation1] ss:$9 sm:$0xff] %v1195_v40  ;;  %v382_v41 = vunpack.c.l.bf16 %v364_v35  ;;  %v379_v42 = vunpack.c.l.bf16 %v362_v36 }
  0x5a   : > { %v517_v46 = vperm.slane %v515_v44, 0  ;;  %v520_v47 = vperm.slane %v518_v45, 0 }
  0x5c   : > { %v527_v48 = vunpack.c.l.bf16 %v517_v46  ;;  %v528_v49 = vunpack.c.l.bf16 %v520_v47 }
  0x5e   : > { %v1434_v51 = vpack.i.bf16 %v528_v49, %v527_v48 }
  0x5f   : > { %v583_v52 = vld [vmem:[#allocation1] sm:$0xff]  ;;  %v584_v53 = vld [vmem:[#allocation1 + $0x9] sm:$0xff] }
  0x60   : > { %1435 = vrot.lane.b32.xlu1 %v1434_v51, %s1595_s21  ;;  %v585_v54 = vpack.i.b16 %v583_v52, %v583_v52  ;;  %v588_v55 = vpack.i.b16 %v584_v53, %v584_v53  ;;  %652 = vst [vmem:[#allocation1] ss:$9 sm:$0xff] %v1196_v50 }
  0x62   : > { %v587_v56 = vperm.slane %v585_v54, 0  ;;  %v590_v57 = vperm.slane %v588_v55, 0 }
  0x64   : > { %v597_v58 = vunpack.c.l.bf16 %v587_v56  ;;  %v598_v59 = vunpack.c.l.bf16 %v590_v57 }
  0x66   : > { %v1439_v61 = vpack.i.bf16 %v598_v59, %v597_v58 }
  0x67   : > { %v653_v62 = vld [vmem:[#allocation1] sm:$0xff]  ;;  %v654_v63 = vld [vmem:[#allocation1 + $0x9] sm:$0xff] }
  0x68   : > { %1440 = vrot.lane.b32.xlu0 %v1439_v61, %s1596_s24  ;;  %v655_v0 = vpack.i.b16 %v653_v62, %v653_v62  ;;  %v658_v1 = vpack.i.b16 %v654_v63, %v654_v63  ;;  %722 = vst [vmem:[#allocation1] ss:$9 sm:$0xff] %v1197_v60 }
  0x6a   : > { %v657_v2 = vperm.slane %v655_v0, 0  ;;  %v660_v3 = vperm.slane %v658_v1, 0 }
  0x6c   : > { %v667_v4 = vunpack.c.l.bf16 %v657_v2  ;;  %v668_v5 = vunpack.c.l.bf16 %v660_v3  ;;  %v434_v3 = vld [vmem:[#allocation2 + $0x18] sm:$0xff]  }
  0x6d   : > { %v526_v19 = vunpack.c.h.bf16 %v434_v3 }
  0x6e   : > { %v1444_v6 = vpack.i.bf16 %v668_v5, %v667_v4  ;;  %v432_v4 = vld [vmem:[#allocation2 + $0x8] sm:$0xff]   ;;  %v452_v5 = vunpack.c.l.bf16 %v434_v3 }
  0x6f   : > { %v723_v7 = vld [vmem:[#allocation1] sm:$0xff]  ;;  %v724_v8 = vld [vmem:[#allocation1 + $0x9] sm:$0xff] }
  0x70   : > { %1445 = vrot.lane.b32.xlu0 %v1444_v6, %s1597_s28  ;;  %v725_v9 = vpack.i.b16 %v723_v7, %v723_v7  ;;  %v728_v10 = vpack.i.b16 %v724_v8, %v724_v8  ;;  %v449_v6 = vunpack.c.l.bf16 %v432_v4 }
  0x72   : > { %v727_v11 = vperm.slane %v725_v9, 0  ;;  %v730_v12 = vperm.slane %v728_v10, 0 }
  0x74   : > { %v737_v13 = vunpack.c.l.bf16 %v727_v11  ;;  %v738_v14 = vunpack.c.l.bf16 %v730_v12 }
  0x76   : > { %v1449_v15 = vpack.i.bf16 %v738_v14, %v737_v13 }
  0x78   : > { %1450 = vrot.lane.b32.xlu1 %v1449_v15, %s1598_s29 }
  0xa2   : > { %v1421_v27 = vpop.permute.xlu2 %1420 }
  0xa3   : > { %v1778_v30 = vunpack.i.h.bf16 %v1421_v27  ;;  %v1422_v31 = vunpack.i.l.bf16 %v1421_v27 }
  0xa5   : > { %v322_v32 = vsel %vm321_vm0, %v1422_v31, %v1778_v30  ;;  %v1782_v33 = vmul.f32 %v1422_v31, %v380_v26  ;;  %v1785_v34 = vmul.f32 %v1422_v31, %v1774_v25 }
  0xa6   : > { %v1787_v37 = vmul.f32 %v381_v29, %v322_v32  ;;  %v1790_v38 = vmul.f32 %v1776_v28, %v322_v32 }
  0xa8   : > { %v334_v39 = vpack.c.bf16 %v1787_v37, %v1782_v33  ;;  %v332_v40 = vpack.c.bf16 %v1790_v38, %v1785_v34  ;;  %v718_v37 = vld [vmem:[#allocation2 + $0x1c] sm:$0xf]  ;;  %v716_v38 = vld [vmem:[#allocation2 + $0xc] sm:$0xf] }
  0xaa   : > { %v1426_v43 = vpop.permute.xlu2 %1425 }
  0xab   : > { %v1428_v44 = vunpack.i.h.bf16 %v1426_v43  ;;  %v1427_v45 = vunpack.i.l.bf16 %v1426_v43  ;;  %v523_v43 = vunpack.c.h.bf16 %v432_v4 }
  0xad   : > { %v392_v46 = vsel %vm391_vm1, %v1427_v45, %v1428_v44  ;;  %v401_v47 = vmul.f32 %v1428_v44, %v382_v41  ;;  %v398_v48 = vmul.f32 %v1428_v44, %v379_v42  ;;  %v399_v49 = vmul.f32 %v1427_v45, %v380_v26 }
  0xae   : > { %v400_v50 = vmul.f32 %v392_v46, %v381_v29  ;;  %v396_v54 = vmul.f32 %v1427_v45, %v1774_v25  ;;  %v397_v55 = vmul.f32 %v392_v46, %v1776_v28  ;;  %v1840_v45 = vunpack.c.h.bf16 %v1770_v21 }
  0xaf   : > { %v405_v51 = vpack.c.bf16 %v401_v47, %v401_v47  ;;  %v403_v52 = vpack.c.bf16 %v398_v48, %v398_v48 }
  0xb0   : > { %v404_v53 = vpack.c.bf16 %v400_v50, %v399_v49  ;;  %v402_v59 = vpack.c.bf16 %v397_v55, %v396_v54  ;;  %v576_v54 = vld [vmem:[#allocation2 + $0x8] sm:$0xff]  }
  0xb1   : > { %416 = vrot.lane.b32.xlu0 %v405_v51, %s1596_s24  ;;  %412 = vrot.lane.b32.xlu1 %v403_v52, %s1596_s24 }
  0xb2   : > { %414 = vrot.lane.b32.xlu2 %v404_v53, %s1596_s24  ;;  %v1416_v56 = vpop.permute.xlu0 %1415 }
  0xb3   : > { %v1802_v57 = vunpack.i.h.bf16 %v1416_v56  ;;  %v1417_v58 = vunpack.i.l.bf16 %v1416_v56 }
  0xb5   : > { %v251_v60 = vsel %vm250_vm2, %v1417_v58, %v1802_v57  ;;  %v1807_v61 = vmul.f32 %v1417_v58, %v1774_v25  ;;  %v1812_v63 = vmul.f32 %v1417_v58, %v380_v26  ;;  %v593_v58 = vunpack.c.h.bf16 %v576_v54 }
  0xb6   : > { %v1810_v62 = vmul.f32 %v1776_v28, %v251_v60  ;;  %v1814_v0 = vmul.f32 %v381_v29, %v251_v60 }
  0xb8   : > { %v261_v1 = vpack.c.bf16 %v1810_v62, %v1807_v61  ;;  %v263_v2 = vpack.c.bf16 %v1814_v0, %v1812_v63 }
  0xb9   : > { %410 = vrot.lane.b32.xlu0 %v402_v59, %s1596_s24 }
  0xca   : > { %v1431_v7 = vpop.permute.xlu1 %1430 }
  0xcb   : > { %v1433_v8 = vunpack.i.h.bf16 %v1431_v7  ;;  %v1432_v9 = vunpack.i.l.bf16 %v1431_v7 }
  0xcd   : > { %v462_v10 = vsel %vm461_vm3, %v1432_v9, %v1433_v8  ;;  %v471_v11 = vmul.f32 %v1433_v8, %v452_v5  ;;  %v468_v12 = vmul.f32 %v1433_v8, %v449_v6  ;;  %v469_v13 = vmul.f32 %v1432_v9, %v380_v26 }
  0xce   : > { %v470_v14 = vmul.f32 %v462_v10, %v381_v29  ;;  %v466_v27 = vmul.f32 %v1432_v9, %v1774_v25  ;;  %v467_v29 = vmul.f32 %v462_v10, %v1776_v28  ;;  %v1842_v25 = vld [vmem:[#allocation2 + $0x18] sm:$0xff]  }
  0xcf   : > { %v475_v15 = vpack.c.bf16 %v471_v11, %v471_v11  ;;  %v473_v16 = vpack.c.bf16 %v468_v12, %v468_v12  ;;  %v596_v28 = vunpack.c.h.bf16 %v1842_v25  ;;  %v648_v9 = vld [vmem:[#allocation2 + $0x18] sm:$0xff]   ;;  %v646_v11 = vld [vmem:[#allocation2 + $0x8] sm:$0xff]  }
  0xd0   : > { %v474_v17 = vpack.c.bf16 %v470_v14, %v469_v13  ;;  %v472_v41 = vpack.c.bf16 %v467_v29, %v466_v27  ;;  %v666_v10 = vunpack.c.h.bf16 %v648_v9  ;;  %v663_v12 = vunpack.c.h.bf16 %v646_v11 }
  0xd1   : > { %486 = vrot.lane.b32.xlu2 %v475_v15, %s1595_s21  ;;  %482 = vrot.lane.b32.xlu0 %v473_v16, %s1595_s21 }
  0xd2   : > { %v1436_v22 = vpop.permute.xlu1 %1435  ;;  %484 = vrot.lane.b32.xlu1 %v474_v17, %s1595_s21 }
  0xd3   : > { %v1438_v24 = vunpack.i.h.bf16 %v1436_v22  ;;  %v1437_v26 = vunpack.i.l.bf16 %v1436_v22 }
  0xd5   : > { %v536_v31 = vsel %vm493_vm4, %v1437_v26, %v1438_v24  ;;  %v545_v32 = vmul.f32 %v1438_v24, %v526_v19  ;;  %v543_v35 = vmul.f32 %v1437_v26, %v1825_v20  ;;  %v542_v48 = vmul.f32 %v1438_v24, %v523_v43 }
  0xd6   : > { %v544_v36 = vmul.f32 %v536_v31, %v1829_v23  ;;  %v540_v50 = vmul.f32 %v1437_v26, %v1837_v18  ;;  %v541_v51 = vmul.f32 %v536_v31, %v1840_v45 }
  0xd7   : > { %v549_v42 = vpack.c.bf16 %v545_v32, %v545_v32  ;;  %v547_v52 = vpack.c.bf16 %v542_v48, %v542_v48  ;;  %v238_v48 = vunpack.c.l.bf16 %v646_v11 }
  0xd8   : > { %v548_v44 = vpack.c.bf16 %v544_v36, %v543_v35  ;;  %v546_v56 = vpack.c.bf16 %v541_v51, %v540_v50 }
  0xd9   : > { %480 = vrot.lane.b32.xlu2 %v472_v41, %s1595_s21 }
  0xda   : > { %v1441_v46 = vpop.permute.xlu0 %1440  ;;  %560 = vrot.lane.b32.xlu1 %v549_v42, %s1594_s20  ;;  %558 = vrot.lane.b32.xlu0 %v548_v44, %s1594_s20 }
  0xdb   : > { %v1443_v47 = vunpack.i.h.bf16 %v1441_v46  ;;  %v1442_v49 = vunpack.i.l.bf16 %v1441_v46 }
  0xdd   : > { %v615_v21 = vmul.f32 %v1443_v47, %v596_v28  ;;  %v606_v55 = vsel %vm423_vm5, %v1442_v49, %v1443_v47  ;;  %v613_v4 = vmul.f32 %v1442_v49, %v1825_v20  ;;  %v612_v6 = vmul.f32 %v1443_v47, %v593_v58 }
  0xde   : > { %v614_v5 = vmul.f32 %v606_v55, %v1829_v23  ;;  %v610_v7 = vmul.f32 %v1442_v49, %v1837_v18  ;;  %v611_v8 = vmul.f32 %v606_v55, %v1840_v45  ;;  %v309_v47 = vunpack.c.l.bf16 %v576_v54 }
  0xdf   : > { %v619_v53 = vpack.c.bf16 %v615_v21, %v615_v21  ;;  %v617_v15 = vpack.c.bf16 %v612_v6, %v612_v6  ;;  %v312_v49 = vunpack.c.l.bf16 %v1842_v25 }
  0xe0   : > { %v618_v14 = vpack.c.bf16 %v614_v5, %v613_v4  ;;  %v616_v16 = vpack.c.bf16 %v611_v8, %v610_v7 }
  0xe1   : > { %556 = vrot.lane.b32.xlu2 %v547_v52, %s1594_s20  ;;  %v331_v50 = vmul.f32 %v1778_v30, %v312_v49  ;;  %v736_v52 = vunpack.c.l.bf16 %v718_v37 }
  0xe2   : > { %554 = vrot.lane.b32.xlu1 %v546_v56, %s1594_s20  ;;  %630 = vrot.lane.b32.xlu0 %v619_v53, %s1593_s6  ;;  %v1446_v59 = vpop.permute.xlu0 %1445  ;;  %v733_v53 = vunpack.c.l.bf16 %v716_v38 }
  0xe3   : > { %v1448_v60 = vunpack.i.h.bf16 %v1446_v59  ;;  %v1447_v3 = vunpack.i.l.bf16 %v1446_v59  ;;  %v335_v21 = vpack.c.bf16 %v331_v50, %v331_v50 }
  0xe5   : > { %v676_v13 = vsel %vm353_vm6, %v1447_v3, %v1448_v60  ;;  %v685_v17 = vmul.f32 %v1448_v60, %v666_v10  ;;  %v683_v19 = vmul.f32 %v1447_v3, %v1825_v20  ;;  %v682_v24 = vmul.f32 %v1448_v60, %v663_v12 }
  0xe6   : > { %v684_v22 = vmul.f32 %v676_v13, %v1829_v23  ;;  %v680_v44 = vmul.f32 %v1447_v3, %v1837_v18  ;;  %v681_v28 = vmul.f32 %v676_v13, %v1840_v45 }
  0xe7   : > { %v689_v31 = vpack.c.bf16 %v685_v17, %v685_v17  ;;  %v687_v36 = vpack.c.bf16 %v682_v24, %v682_v24 }
  0xe8   : > { %v688_v35 = vpack.c.bf16 %v684_v22, %v683_v19  ;;  %v686_v46 = vpack.c.bf16 %v681_v28, %v680_v44 }
  0xe9   : > { %628 = vrot.lane.b32.xlu2 %v618_v14, %s1593_s6 }
  0xea   : > { %626 = vrot.lane.b32.xlu1 %v617_v15, %s1593_s6  ;;  %624 = vrot.lane.b32.xlu0 %v616_v16, %s1593_s6  ;;  %v1451_v26 = vpop.permute.xlu1 %1450 }
  0xeb   : > { %v1453_v27 = vunpack.i.h.bf16 %v1451_v26  ;;  %v1452_v29 = vunpack.i.l.bf16 %v1451_v26 }
  0xed   : > { %v746_v32 = vsel %vm283_vm7, %v1452_v29, %v1453_v27  ;;  %v753_v41 = vmul.f32 %v1452_v29, %v1825_v20  ;;  %v328_v20 = vmul.f32 %v1778_v30, %v309_v47  ;;  %v750_v33 = vmul.f32 %v1452_v29, %v1837_v18 }
  0xee   : > { %v754_v42 = vmul.f32 %v746_v32, %v1829_v23  ;;  %v257_v23 = vmul.f32 %v1802_v57, %v238_v48  ;;  %v751_v34 = vmul.f32 %v746_v32, %v1840_v45  ;;  %v755_v18 = vmul.f32 %v1453_v27, %v736_v52 }
  0xef   : > { %v333_v51 = vpack.c.bf16 %v328_v20, %v328_v20  ;;  %v752_v45 = vmul.f32 %v1453_v27, %v733_v53 }
  0xf0   : > { %v758_v43 = vpack.c.bf16 %v754_v42, %v753_v41  ;;  %v262_v25 = vpack.c.bf16 %v257_v23, %v257_v23  ;;  %v759_v55 = vpack.c.bf16 %v755_v18, %v755_v18 }
  0xf1   : > { %700 = vrot.lane.b32.xlu2 %v689_v31, %s1592_s30  ;;  %v757_v56 = vpack.c.bf16 %v752_v45, %v752_v45 }
  0xf2   : > { %698 = vrot.lane.b32.xlu1 %v688_v35, %s1592_s30  ;;  %696 = vrot.lane.b32.xlu0 %v687_v36, %s1592_s30 }
  0xf9   : > { %694 = vrot.lane.b32.xlu2 %v686_v46, %s1592_s30  ;;  %s1342_s30 = sshll.u32 %s1642_s16, 7  ;;  %s1082_s16 = scalar_lea.sflag [#allocation6], %s1716_s10 }
  0xfa   : > { %344 = vrot.lane.b32.xlu0 %v334_v39, %s1597_s28  ;;  %340 = vrot.lane.b32.xlu1 %v332_v40, %s1597_s28  ;;  %v756_v39 = vpack.c.bf16 %v751_v34, %v750_v33  ;;  %v241_v40 = vunpack.c.l.bf16 %v648_v9  ;;  %s1093_s6 = scalar_lea.hbm %s2001_s3, %s1342_s30 }
  0xfb   : > { %s1096_s11 = sshll.u32 %s1093_s6, 4  ;;  %s1097_s11 = int_to_ptr.hbm [resolvable:$true] %s1096_s11 }
  0xfc   : > { %v260_v30 = vmul.f32 %v1802_v57, %v241_v40  ;;  %s1528_s20 = sshra.s32 %s1097_s11, 4  ;;  %s1529_s20 = int_to_ptr.hbm [resolvable:$true] %s1528_s20 }
  0xfd   : > { %s1530_s23 = scalar_lea.hbm %s1529_s20, 128  ;;  %p1535_p11 = scmp.lt.s32.totalorder %s1529_s20, %s2001_s3 }
  0xfe   : > { %v264_v54 = vpack.c.bf16 %v260_v30, %v260_v30  ;;  %p1531_p1 = scmp.ne.s32.totalorder %s1529_s20, %s1530_s23  ;;  %p1536_p9 = scmp.lt.s32.totalorder %s1534_s22, %s1530_s23 }
 0x100   : > { %p1532_p4 = pnand %p1531_p1, %p1688_p7  ;;  %p1537_p2 = por %p1536_p9, %p1535_p11 }
 0x101   : > { %342 = vrot.lane.b32.xlu2 %v333_v51, %s1597_s28 }
 0x102   : > { %271 = vrot.lane.b32.xlu0 %v262_v25, %s1598_s29  ;;  %346 = vrot.lane.b32.xlu1 %v335_v21, %s1597_s28  ;;  %p1533_p8 = pneg %p1532_p4 }
 0x104   : > { %p1538_p10 = pnand %p1537_p2, %p1533_p8 }
 0x109   : > { %269 = vrot.lane.b32.xlu2 %v261_v1, %s1598_s29 }
 0x10a   : > { %764 = vrot.lane.b32.xlu0 %v756_v39, %s1591_s27  ;;  %273 = vrot.lane.b32.xlu1 %v263_v2, %s1598_s29 }
 0x10c   : > { %v415_v61 = vpop.permute.xlu2 %414 }
 0x10d   : > { %v420_v63 = vrot.slane %v415_v61, 4 }
 0x111   : > { %275 = vrot.lane.b32.xlu2 %v264_v54, %s1598_s29 }
 0x112   : > { %770 = vrot.lane.b32.xlu0 %v759_v55, %s1591_s27  ;;  %766 = vrot.lane.b32.xlu1 %v757_v56, %s1591_s27 }
 0x119   : > { %768 = vrot.lane.b32.xlu2 %v758_v43, %s1591_s27  ;;  %s1945_s27 = scalar_lea.vmem [#allocation9], %s1190_s25 }
 0x11a   : > { %s1094_s9 = sshll.u32 %s1945_s27, 4  ;;  %s1095_s9 = int_to_ptr.vmem [resolvable:$true] %s1094_s9 }
 0x123   : > { %v417_v62 = vpop.permute.xlu0 %416  ;;  %v413_v2 = vpop.permute.xlu1 %412 }
 0x124   : > { %v421_v0 = vrot.slane %v417_v62, 4  ;;  %v419_v58 = vrot.slane %v413_v2, 4 }
 0x126   : > { %v425_v57 = vsel %vm281_vm8, %v420_v63, %v421_v0 }
 0x127   : > { %v426_v1 = vsel %vm423_vm5, %v415_v61, %v425_v57 }
 0x128   : > { %430 = vst [vmem:[#allocation3 + $0x28] sm:$0xff] %v426_v1 }
 0x12b   : > { %v487_v59 = vpop.permute.xlu2 %486  ;;  %v411_v60 = vpop.permute.xlu0 %410 }
 0x12c   : > { %v418_v3 = vrot.slane %v411_v60, 4  ;;  %v491_v12 = vrot.slane %v487_v59, 4 }
 0x12e   : > { %v422_v4 = vsel %vm281_vm8, %v418_v3, %v419_v58 }
 0x12f   : > { %v424_v5 = vsel %vm423_vm5, %v411_v60, %v422_v4 }
 0x130   : > { %429 = vst [vmem:[#allocation3 + $0x20] sm:$0xff] %v424_v5 }
 0x133   : > { %v481_v6 = vpop.permute.xlu2 %480 }
 0x134   : > { %v488_v9 = vrot.slane %v481_v6, 4 }
 0x13b   : > { %v557_v7 = vpop.permute.xlu2 %556 }
 0x13c   : > { %v563_v41 = vrot.slane %v557_v7, 4 }
 0x143   : > { %v483_v8 = vpop.permute.xlu0 %482  ;;  %v629_v13 = vpop.permute.xlu2 %628 }
 0x144   : > { %v489_v10 = vrot.slane %v483_v8, 4  ;;  %v485_v11 = vpop.permute.xlu1 %484  ;;  %v634_v42 = vrot.slane %v629_v13, 4 }
 0x145   : > { %v490_v14 = vrot.slane %v485_v11, 4 }
 0x146   : > { %v492_v15 = vsel %vm281_vm8, %v488_v9, %v489_v10 }
 0x147   : > { %v494_v16 = vsel %vm493_vm4, %v481_v6, %v492_v15  ;;  %v495_v17 = vsel %vm281_vm8, %v490_v14, %v491_v12 }
 0x148   : > { %499 = vst [vmem:[#allocation3 + $0x30] sm:$0xff] %v494_v16  ;;  %v496_v19 = vsel %vm493_vm4, %v485_v11, %v495_v17 }
 0x149   : > { %500 = vst [vmem:[#allocation3 + $0x38] sm:$0xff] %v496_v19 }
 0x14b   : > { %v701_v29 = vpop.permute.xlu2 %700 }
 0x14c   : > { %v561_v22 = vpop.permute.xlu1 %560  ;;  %v559_v24 = vpop.permute.xlu0 %558  ;;  %v705_v38 = vrot.slane %v701_v29, 4 }
 0x14d   : > { %v565_v26 = vrot.slane %v561_v22, 4  ;;  %v564_v27 = vrot.slane %v559_v24, 4 }
 0x14f   : > { %v569_v31 = vsel %vm281_vm8, %v564_v27, %v565_v26 }
 0x150   : > { %v570_v32 = vsel %vm461_vm3, %v559_v24, %v569_v31  ;;  %v1264_v31 = vld [vmem:[#allocation3 + $0x40] sm:$0xf] }
 0x151   : > { %574 = vst [vmem:[#allocation3 + $0x58] sm:$0xff] %v570_v32  ;;  %v1333_v32 = vld [vmem:[#allocation3 + $0x44] sm:$0xf0] }
 0x153   : > { %v695_v49 = vpop.permute.xlu2 %694 }
 0x154   : > { %v555_v35 = vpop.permute.xlu1 %554  ;;  %v631_v36 = vpop.permute.xlu0 %630  ;;  %v702_v39 = vrot.slane %v695_v49, 4 }
 0x155   : > { %v562_v43 = vrot.slane %v555_v35, 4  ;;  %v635_v44 = vrot.slane %v631_v36, 4  ;;  %v1266_v36 = vld [vmem:[#allocation3 + $0x48] sm:$0xf0] }
 0x157   : > { %v566_v28 = vsel %vm281_vm8, %v562_v43, %v563_v41  ;;  %v639_v46 = vsel %vm281_vm8, %v634_v42, %v635_v44 }
 0x158   : > { %v568_v47 = vsel %vm461_vm3, %v555_v35, %v566_v28  ;;  %v640_v48 = vsel %vm391_vm1, %v629_v13, %v639_v46  ;;  %v1335_v19 = vld [vmem:[#allocation3 + $0x54] sm:$0xf0]  ;;  %v1274_v29 = vld [vmem:[#allocation3 + $0x58] sm:$0xf0]  ;;  %v1332_v35 = vld [vmem:[#allocation3 + $0x44] sm:$0xf]  ;;  %v1265_v28 = vor.u32 %v1333_v32, %v1264_v31 }
 0x159   : > { %573 = vst [vmem:[#allocation3 + $0x50] sm:$0xff] %v568_v47  ;;  %v1269_v46 = vor.u32 %v1332_v35, %v1266_v36  ;;  %v1318_v31 = vld [vmem:[#allocation7 + $0x14] sm:$0xf]  ;;  %v1210_v32 = vld [vmem:[#allocation7 + $0x18] sm:$0xf0] }
 0x15a   : > { %644 = vst [vmem:[#allocation3 + $0x68] sm:$0xff] %v640_v48  ;;  %v1213_v35 = vor.u32 %v1318_v31, %v1210_v32  ;;  %v1216_v36 = vld [vmem:[#allocation7 + $0x20] sm:$0xf] }
 0x15b   : > { %v343_v33 = vpop.permute.xlu2 %342 }
 0x15c   : > { %v627_v20 = vpop.permute.xlu1 %626  ;;  %v625_v23 = vpop.permute.xlu0 %624  ;;  %v349_v56 = vrot.slane %v343_v33, 4 }
 0x15d   : > { %v633_v50 = vrot.slane %v627_v20, 4  ;;  %v632_v51 = vrot.slane %v625_v23, 4 }
 0x15f   : > { %v636_v25 = vsel %vm281_vm8, %v632_v51, %v633_v50  ;;  %v1330_v50 = vld [vmem:[#allocation3 + $0x34] sm:$0xf]  ;;  %v1258_v51 = vld [vmem:[#allocation3 + $0x38] sm:$0xf0] }
 0x160   : > { %v638_v21 = vsel %vm391_vm1, %v625_v23, %v636_v25  ;;  %v1272_v17 = vld [vmem:[#allocation3 + $0x50] sm:$0xf]  ;;  %v1334_v22 = vld [vmem:[#allocation3 + $0x54] sm:$0xf]  ;;  %v1331_v23 = vld [vmem:[#allocation3 + $0x34] sm:$0xf0] }
 0x161   : > { %643 = vst [vmem:[#allocation3 + $0x60] sm:$0xff] %v638_v21  ;;  %v1337_v7 = vld [vmem:[#allocation3 + $0x64] sm:$0xf0]  ;;  %v1282_v12 = vld [vmem:[#allocation3 + $0x68] sm:$0xf0]  ;;  %v1273_v41 = vor.u32 %v1335_v19, %v1272_v17  ;;  %v1277_v42 = vor.u32 %v1334_v22, %v1274_v29 }
 0x163   : > { %v270_v62 = vpop.permute.xlu2 %269 }
 0x164   : > { %v699_v34 = vpop.permute.xlu1 %698  ;;  %v697_v37 = vpop.permute.xlu0 %696  ;;  %v277_v8 = vrot.slane %v270_v62, 4 }
 0x165   : > { %v704_v40 = vrot.slane %v699_v34, 4  ;;  %v703_v52 = vrot.slane %v697_v37, 4  ;;  %v1248_v37 = vld [vmem:[#allocation3 + $0x20] sm:$0xf] }
 0x167   : > { %v709_v53 = vsel %vm281_vm8, %v704_v40, %v705_v38  ;;  %v706_v30 = vsel %vm281_vm8, %v702_v39, %v703_v52  ;;  %v1328_v38 = vld [vmem:[#allocation3 + $0x24] sm:$0xf]  ;;  %v1329_v52 = vld [vmem:[#allocation3 + $0x24] sm:$0xf0] }
 0x168   : > { %v710_v18 = vsel %vm321_vm0, %v699_v34, %v709_v53  ;;  %v708_v45 = vsel %vm321_vm0, %v695_v49, %v706_v30  ;;  %v1280_v3 = vld [vmem:[#allocation3 + $0x60] sm:$0xf]  ;;  %v1336_v4 = vld [vmem:[#allocation3 + $0x64] sm:$0xf]  ;;  %v1256_v49 = vld [vmem:[#allocation3 + $0x30] sm:$0xf]  ;;  %v1261_v34 = vor.u32 %v1330_v50, %v1258_v51 }
 0x169   : > { %714 = vst [vmem:[#allocation3 + $0x78] sm:$0xff] %v710_v18  ;;  %v1281_v13 = vor.u32 %v1337_v7, %v1280_v3  ;;  %v1285_v14 = vor.u32 %v1336_v4, %v1282_v12  ;;  %v1257_v33 = vor.u32 %v1331_v23, %v1256_v49  ;;  %v1316_v12 = vld [vmem:[#allocation7 + $0x4] sm:$0xf]  ;;  %v1322_v49 = vld [vmem:[#allocation7 + $0x34] sm:$0xf] }
 0x16a   : > { %713 = vst [vmem:[#allocation3 + $0x70] sm:$0xff] %v708_v45 }
 0x16b   : > { %v276_v24 = vpop.permute.xlu2 %275 }
 0x16c   : > { %v345_v54 = vpop.permute.xlu0 %344  ;;  %v341_v55 = vpop.permute.xlu1 %340  ;;  %v280_v47 = vrot.slane %v276_v24, 4 }
 0x16d   : > { %v348_v61 = vrot.slane %v341_v55, 4  ;;  %v350_v9 = vrot.slane %v345_v54, 4 }
 0x16f   : > { %v352_v63 = vsel %vm281_vm8, %v348_v61, %v349_v56 }
 0x170   : > { %v354_v0 = vsel %vm353_vm6, %v341_v55, %v352_v63  ;;  %v1339_v57 = vld [vmem:[#allocation3 + $0x74] sm:$0xf0]  ;;  %v1290_v1 = vld [vmem:[#allocation3 + $0x78] sm:$0xf0]  ;;  %v1249_v55 = vor.u32 %v1329_v52, %v1248_v37 }
 0x171   : > { %359 = vst [vmem:[#allocation3 + $0x10] sm:$0xff] %v354_v0  ;;  %v1288_v2 = vld [vmem:[#allocation3 + $0x70] sm:$0xf]  ;;  %v1338_v58 = vld [vmem:[#allocation3 + $0x74] sm:$0xf] }
 0x172   : > { %v1289_v59 = vor.u32 %v1339_v57, %v1288_v2  ;;  %v1293_v60 = vor.u32 %v1338_v58, %v1290_v1 }
 0x173   : > { %v769_v21 = vpop.permute.xlu2 %768 }
 0x174   : > { %949 = vmatpush.bf16.msra.mxu0 %v1289_v59  ;;  %1007 = vmatpush.bf16.msra.mxu2 %v1293_v60  ;;  %v272_v5 = vpop.permute.xlu0 %271  ;;  %v347_v6 = vpop.permute.xlu1 %346  ;;  %v774_v53 = vrot.slane %v769_v21, 4 }
 0x175   : > { %v278_v10 = vrot.slane %v272_v5, 4  ;;  %v351_v11 = vrot.slane %v347_v6, 4  ;;  %v1200_v5 = vld [vmem:[#allocation7] sm:$0xf]  ;;  %v1317_v6 = vld [vmem:[#allocation7 + $0x4] sm:$0xf0] }
 0x177   : > { %v282_v15 = vsel %vm281_vm8, %v277_v8, %v278_v10  ;;  %v355_v16 = vsel %vm281_vm8, %v350_v9, %v351_v11  ;;  %v1201_v11 = vor.u32 %v1317_v6, %v1200_v5 }
 0x178   : > { %v284_v26 = vsel %vm283_vm7, %v270_v62, %v282_v15  ;;  %v356_v27 = vsel %vm353_vm6, %v345_v54, %v355_v16  ;;  %950 = vmatpush.bf16.msra.mxu0 %v1281_v13  ;;  %1008 = vmatpush.bf16.msra.mxu2 %v1285_v14  ;;  %v1250_v54 = vld [vmem:[#allocation3 + $0x28] sm:$0xf0]  ;;  %v1240_v2 = vld [vmem:[#allocation3 + $0x10] sm:$0xf]  ;;  %v1326_v58 = vld [vmem:[#allocation3 + $0x14] sm:$0xf] }
 0x179   : > { %289 = vst [vmem:[#allocation3] sm:$0xff] %v284_v26  ;;  %v1253_v56 = vor.u32 %v1328_v38, %v1250_v54  ;;  %v1202_v15 = vld [vmem:[#allocation7 + $0x8] sm:$0xf0]  ;;  %v1208_v26 = vld [vmem:[#allocation7 + $0x10] sm:$0xf] }
 0x17a   : > { %360 = vst [vmem:[#allocation3 + $0x18] sm:$0xff] %v356_v27  ;;  %v1205_v24 = vor.u32 %v1316_v12, %v1202_v15  ;;  %v1319_v27 = vld [vmem:[#allocation7 + $0x14] sm:$0xf0] }
 0x17b   : > { %v1209_v29 = vor.u32 %v1319_v27, %v1208_v26 }
 0x17c   : > { %951 = vmatpush.bf16.msra.mxu0 %v1273_v41  ;;  %1009 = vmatpush.bf16.msra.mxu2 %v1277_v42  ;;  %v765_v43 = vpop.permute.xlu0 %764  ;;  %v274_v44 = vpop.permute.xlu1 %273  ;;  %v1321_v41 = vld [vmem:[#allocation7 + $0x24] sm:$0xf0] }
 0x17d   : > { %v279_v48 = vrot.slane %v274_v44, 4  ;;  %v772_v30 = vrot.slane %v765_v43, 4  ;;  %v1217_v42 = vor.u32 %v1321_v41, %v1216_v36 }
 0x17f   : > { %v285_v20 = vsel %vm281_vm8, %v279_v48, %v280_v47  ;;  %v1323_v47 = vld [vmem:[#allocation7 + $0x34] sm:$0xf0] }
 0x180   : > { %v286_v25 = vsel %vm283_vm7, %v274_v44, %v285_v20  ;;  %952 = vmatpush.bf16.msra.mxu0 %v1265_v28  ;;  %1010 = vmatpush.bf16.msra.mxu2 %v1269_v46  ;;  %v1232_v7 = vld [vmem:[#allocation3] sm:$0xf]  ;;  %v1324_v8 = vld [vmem:[#allocation3 + $0x4] sm:$0xf]  ;;  %v1218_v44 = vld [vmem:[#allocation7 + $0x28] sm:$0xf0] }
 0x181   : > { %290 = vst [vmem:[#allocation3 + $0x8] sm:$0xff] %v286_v25  ;;  %v1327_v63 = vld [vmem:[#allocation3 + $0x14] sm:$0xf0]  ;;  %v1242_v0 = vld [vmem:[#allocation3 + $0x18] sm:$0xf0] }
 0x182   : > { %v1241_v59 = vor.u32 %v1327_v63, %v1240_v2  ;;  %v1245_v60 = vor.u32 %v1326_v58, %v1242_v0  ;;  %v1224_v46 = vld [vmem:[#allocation7 + $0x30] sm:$0xf]  ;;  %v1226_v20 = vld [vmem:[#allocation7 + $0x38] sm:$0xf0] }
 0x183   : > { %v1225_v48 = vor.u32 %v1323_v47, %v1224_v46  ;;  %v1229_v23 = vor.u32 %v1322_v49, %v1226_v20 }
 0x184   : > { %953 = vmatpush.bf16.msra.mxu0 %v1257_v33  ;;  %1011 = vmatpush.bf16.msra.mxu2 %v1261_v34  ;;  %v771_v39 = vpop.permute.xlu0 %770  ;;  %v767_v40 = vpop.permute.xlu1 %766 }
 0x185   : > { %v775_v18 = vrot.slane %v771_v39, 4  ;;  %v773_v45 = vrot.slane %v767_v40, 4 }
 0x187   : > { %v779_v61 = vsel %vm281_vm8, %v774_v53, %v775_v18  ;;  %v776_v62 = vsel %vm281_vm8, %v772_v30, %v773_v45 }
 0x188   : > { %v780_v57 = vsel %vm250_vm2, %v769_v21, %v779_v61  ;;  %v778_v1 = vsel %vm250_vm2, %v765_v43, %v776_v62  ;;  %954 = vmatpush.bf16.msra.mxu0 %v1249_v55  ;;  %1012 = vmatpush.bf16.msra.mxu2 %v1253_v56  ;;  %v1325_v3 = vld [vmem:[#allocation3 + $0x4] sm:$0xf0]  ;;  %v1234_v4 = vld [vmem:[#allocation3 + $0x8] sm:$0xf0]  ;;  %v1320_v43 = vld [vmem:[#allocation7 + $0x24] sm:$0xf] }
 0x189   : > { %784 = vst [vmem:[#allocation3 + $0x88] sm:$0xff] %v780_v57  ;;  %v1233_v9 = vor.u32 %v1325_v3, %v1232_v7  ;;  %v1237_v10 = vor.u32 %v1324_v8, %v1234_v4  ;;  %v1221_v28 = vor.u32 %v1320_v43, %v1218_v44 }
 0x18a   : > { %783 = vst [vmem:[#allocation3 + $0x80] sm:$0xff] %v778_v1 }
 0x18c   : > { %955 = vmatpush.bf16.msra.mxu0 %v1241_v59  ;;  %1013 = vmatpush.bf16.msra.mxu2 %v1245_v60 }
 0x190   : > { %956 = vmatpush.bf16.msra.mxu0 %v1233_v9  ;;  %1014 = vmatpush.bf16.msra.mxu2 %v1237_v10  ;;  %v1341_v13 = vld [vmem:[#allocation3 + $0x84] sm:$0xf0]  ;;  %v1298_v14 = vld [vmem:[#allocation3 + $0x88] sm:$0xf0] }
 0x191   : > { %v1296_v16 = vld [vmem:[#allocation3 + $0x80] sm:$0xf]  ;;  %v1340_v17 = vld [vmem:[#allocation3 + $0x84] sm:$0xf] }
 0x192   : > { %v1297_v19 = vor.u32 %v1341_v13, %v1296_v16  ;;  %v1301_v22 = vor.u32 %v1340_v17, %v1298_v14 }
 0x193   : > { %1015 = vmatmul.bf16.vlgmr.msra.gmra.mxu2 %v1201_v11  ;;  %957 = vmatmul.bf16.vlgmr.msra.gmra.mxu0 %v1201_v11 }
 0x194   : > { %985 = vmatpush.bf16.msra.mxu1 %v1297_v19  ;;  %1043 = vmatpush.bf16.msra.mxu3 %v1301_v22 }
 0x197   : > { %1302 = vmatmul.msk.bf16.vlgmr.msra.gmra.mxu1 %vm353_vm6, %v1205_v24  ;;  %1306 = vmatmul.msk.bf16.vlgmr.msra.gmra.mxu3 %vm353_vm6, %v1205_v24 }
 0x1a3   : > { %1020 = vmatmul.bf16.gmra.mxu2 %v1209_v29  ;;  %962 = vmatmul.bf16.gmra.mxu0 %v1209_v29 }
 0x1a7   : > { %1303 = vmatmul.msk.bf16.gmra.mxu1 %vm353_vm6, %v1213_v35  ;;  %1307 = vmatmul.msk.bf16.gmra.mxu3 %vm353_vm6, %v1213_v35 }
 0x1b3   : > { %1025 = vmatmul.bf16.gmra.mxu2 %v1217_v42  ;;  %967 = vmatmul.bf16.gmra.mxu0 %v1217_v42 }
 0x1b7   : > { %1304 = vmatmul.msk.bf16.gmra.mxu1 %vm353_vm6, %v1221_v28  ;;  %1308 = vmatmul.msk.bf16.gmra.mxu3 %vm353_vm6, %v1221_v28 }
 0x1c3   : > { %1030 = vmatmul.bf16.gmra.mxu2 %v1225_v48  ;;  %972 = vmatmul.bf16.gmra.mxu0 %v1225_v48 }
 0x1c7   : > { %1305 = vmatmul.msk.bf16.gmra.mxu1 %vm353_vm6, %v1229_v23  ;;  %1309 = vmatmul.msk.bf16.gmra.mxu3 %vm353_vm6, %v1229_v23 }
 0x210   : > { %v958_v50 = vpop.f32.mrf.mxu0 }
 0x214   : > { %v987_v51 = vpop.f32.mrf.mxu1 }
 0x215   : > { %v988_v25 = vadd.f32 %v987_v51, %v958_v50 }
 0x216   : > { %v1016_v21 = vpop.f32.mrf.mxu2 }
 0x217   : > { %1065 = vst [vmem:[%s1945_s27] sm:$0xff] %v988_v25 }
 0x218   : > { %v960_v33 = vpop.f32.mrf.mxu0 }
 0x21a   : > { %v1045_v34 = vpop.f32.mrf.mxu3 }
 0x21b   : > { %v1046_v37 = vadd.f32 %v1045_v34, %v1016_v21 }
 0x21c   : > { %v989_v38 = vpop.f32.mrf.mxu1 }
 0x21d   : > { %1066 = vst [vmem:[%s1945_s27 + $0x8] sm:$0xff] %v1046_v37  ;;  %v990_v39 = vadd.f32 %v989_v38, %v960_v33 }
 0x21e   : > { %v1018_v40 = vpop.f32.mrf.mxu2 }
 0x21f   : > { %1067 = vst [vmem:[%s1945_s27 + $0x10] sm:$0xff] %v990_v39 }
 0x220   : > { %v963_v52 = vpop.f32.mrf.mxu0 }
 0x222   : > { %v1047_v53 = vpop.f32.mrf.mxu3 }
 0x223   : > { %v1048_v30 = vadd.f32 %v1047_v53, %v1018_v40 }
 0x224   : > { %v992_v18 = vpop.f32.mrf.mxu1 }
 0x225   : > { %1068 = vst [vmem:[%s1945_s27 + $0x18] sm:$0xff] %v1048_v30  ;;  %v993_v45 = vadd.f32 %v992_v18, %v963_v52 }
 0x226   : > { %v1021_v54 = vpop.f32.mrf.mxu2 }
 0x227   : > { %1069 = vst [vmem:[%s1945_s27 + $0x20] sm:$0xff] %v993_v45 }
 0x228   : > { %v965_v55 = vpop.f32.mrf.mxu0 }
 0x22a   : > { %v1050_v56 = vpop.f32.mrf.mxu3 }
 0x22b   : > { %v1051_v61 = vadd.f32 %v1050_v56, %v1021_v54 }
 0x22c   : > { %v994_v62 = vpop.f32.mrf.mxu1 }
 0x22d   : > { %1070 = vst [vmem:[%s1945_s27 + $0x28] sm:$0xff] %v1051_v61  ;;  %v995_v63 = vadd.f32 %v994_v62, %v965_v55 }
 0x22e   : > { %v1023_v0 = vpop.f32.mrf.mxu2 }
 0x22f   : > { %1071 = vst [vmem:[%s1945_s27 + $0x30] sm:$0xff] %v995_v63 }
 0x230   : > { %v968_v57 = vpop.f32.mrf.mxu0 }
 0x232   : > { %v1052_v1 = vpop.f32.mrf.mxu3 }
 0x233   : > { %v1053_v2 = vadd.f32 %v1052_v1, %v1023_v0 }
 0x234   : > { %v997_v58 = vpop.f32.mrf.mxu1 }
 0x235   : > { %1072 = vst [vmem:[%s1945_s27 + $0x38] sm:$0xff] %v1053_v2  ;;  %v998_v59 = vadd.f32 %v997_v58, %v968_v57 }
 0x236   : > { %v1026_v60 = vpop.f32.mrf.mxu2 }
 0x237   : > { %1073 = vst [vmem:[%s1945_s27 + $0x40] sm:$0xff] %v998_v59 }
 0x238   : > { %v970_v3 = vpop.f32.mrf.mxu0 }
 0x23a   : > { %v1055_v4 = vpop.f32.mrf.mxu3 }
 0x23b   : > { %v1056_v5 = vadd.f32 %v1055_v4, %v1026_v60 }
 0x23c   : > { %v999_v6 = vpop.f32.mrf.mxu1 }
 0x23d   : > { %1074 = vst [vmem:[%s1945_s27 + $0x48] sm:$0xff] %v1056_v5  ;;  %v1000_v7 = vadd.f32 %v999_v6, %v970_v3 }
 0x23e   : > { %v1028_v8 = vpop.f32.mrf.mxu2 }
 0x23f   : > { %1075 = vst [vmem:[%s1945_s27 + $0x50] sm:$0xff] %v1000_v7 }
 0x240   : > { %v973_v9 = vpop.f32.mrf.mxu0 }
 0x242   : > { %v1057_v10 = vpop.f32.mrf.mxu3 }
 0x243   : > { %v1058_v11 = vadd.f32 %v1057_v10, %v1028_v8 }
 0x244   : > { %v1002_v12 = vpop.f32.mrf.mxu1 }
 0x245   : > { %1076 = vst [vmem:[%s1945_s27 + $0x58] sm:$0xff] %v1058_v11  ;;  %v1003_v13 = vadd.f32 %v1002_v12, %v973_v9 }
 0x246   : > { %v1031_v14 = vpop.f32.mrf.mxu2 }
 0x247   : > { %1077 = vst [vmem:[%s1945_s27 + $0x60] sm:$0xff] %v1003_v13 }
 0x248   : > { %v975_v17 = vpop.f32.mrf.mxu0 }
 0x24a   : > { %v1060_v15 = vpop.f32.mrf.mxu3 }
 0x24b   : > { %v1061_v16 = vadd.f32 %v1060_v15, %v1031_v14 }
 0x24c   : > { %v1004_v19 = vpop.f32.mrf.mxu1 }
 0x24d   : > { %1078 = vst [vmem:[%s1945_s27 + $0x68] sm:$0xff] %v1061_v16  ;;  %v1005_v22 = vadd.f32 %v1004_v19, %v975_v17 }
 0x24e   : > { %v1033_v24 = vpop.f32.mrf.mxu2 }
 0x24f   : > { %1079 = vst [vmem:[%s1945_s27 + $0x70] sm:$0xff] %v1005_v22 }
 0x252   : > { %v1062_v26 = vpop.f32.mrf.mxu3 }
 0x253   : > { %v1063_v27 = vadd.f32 %v1062_v26, %v1033_v24 }
 0x255   : > { %1080 = vst [vmem:[%s1945_s27 + $0x78] sm:$0xff] %v1063_v27 }
 0x256   : > { %1541 = shalt.err (!%p1538_p10)
}
 0x257   : > { %s1600_s10 = smov 256  }
 0x258   : > { %1349 = dma.vmem_to_hbm [thread:$0]  (%p1688_p7), %s1095_s9, 2048, %s1097_s11, %s1082_s16, %s1600_s10, %s1600_s10, %s1597_s28  }
 0x259 PF: > { %s1111_s29 = sand.u32 1, %s1572_s12   ;;  %p2007_p12 = scmp.ge.s32.totalorder %s1584_s15, 2 }
 0x25a   : > { %s1112_s25 = scalar_lea.sflag [#allocation6], %s1111_s29 }
 0x25b   : > { %p1360_p13 = pnand %p2007_p12, %p1656_p6 }
 0x25d   : > { %p1361_p0 = pneg %p1360_p13 }
 0x25f   : > { %1567 = dma.done.wait (%p1361_p0), %s1112_s25, 2048  }
 0x260   : > { %1569 = vsyncadd (%p1361_p0), %s1112_s25, 4294965248  ;;  %p17_p3 = scmp.ge.s32.totalorder %s1674_s26, 4   ;;  %s2008_s12 = smov %s1576_s13 }
 0x261   : > { %s2009_s13 = smov %s1580_s14  ;;  %s2010_s14 = smov %s1684_s4 }
 0x262   : > { %s2011_s15 = smov %s1674_s26  ;;  %19 = sbr.rel (!%p17_p3) target bundleno = 6 (0x6), region = 88 }
 0x267   :  { %1118 = vsyncpa [#allocation5], 1 }
 0x268   :  { %1120 = vsyncpa [#allocation5 + $0x1], 1 }
 0x269   :  { %1121 = vsyncpa [#allocation8], 1 }
 0x26a   :  { %1122 = vsyncpa [#allocation6], 1 }
 0x26b   :  { %1124 = vsyncpa [#allocation6 + $0x1], 1 }

</bundles_post_ra>
